<compile_context>
chip_gen: v7x
topology: tpu7x:2x2x1
jax: 0.10.0
libtpu: 0.0.40
codegen_flags: <defaults>
</compile_context>

<pallas_src>
import jax
import jax.numpy as jnp
from jax.experimental import pallas as pl
from jax.experimental.pallas import tpu as pltpu

INV_GAUSS_VAR = 0.54
GAUSS_C = 1.0


def gmm_kernel(params_ref, mu_ref, out_ref):
    # params_ref: SMEM (5,) f32 = [x0, x1, a, b, c]
    #   a = -0.5*cov00, b = -0.5*(cov01 + cov10), c = -0.5*cov11
    # mu_ref : VMEM (2, TK) f32  (row 0 = mu_x, row 1 = mu_y, lane-dense in K)
    # out_ref: VMEM (1, TK) f32  (lane-dense output)
    x0 = params_ref[0]
    x1 = params_ref[1]
    a = params_ref[2]
    b = params_ref[3]
    c = params_ref[4]

    dx = x0 - mu_ref[0:1, :]          # (1, TK)  VPU broadcast-subtract
    dy = x1 - mu_ref[1:2, :]          # (1, TK)

    # -0.5 * diag(d @ cov @ d.T), expanded elementwise (no MXU, no XLU reduce).
    quad = a * (dx * dx) + b * (dx * dy) + c * (dy * dy)   # (1, TK)

    # GAUSS_C == 1.0 -> no extra multiply; exp is the only EUP op.
    out_ref[...] = jnp.exp(quad)


def gmm_agent_forward(x, mu, cov, *, tk=512):
    """x: (2,), mu: (K, 2), cov: (2, 2)  ->  (K,) float32."""
    K = mu.shape[0]
    tk = max(128, (tk // 128) * 128)          # lane-dense tile, multiple of 128
    k_pad = ((K + tk - 1) // tk) * tk

    # Lane-dense, padded (2, K_pad) slab of centers (padding sliced off below).
    mu_t = jnp.zeros((2, k_pad), jnp.float32).at[:, :K].set(
        jnp.asarray(mu, jnp.float32).T)

    x = jnp.asarray(x, jnp.float32)
    cov = jnp.asarray(cov, jnp.float32)
    # Fold the -0.5 into the cov scalars; (c01 + c10) keeps this exact for
    # non-symmetric cov as well.
    params = jnp.stack([
        x[0],
        x[1],
        -0.5 * cov[0, 0],
        -0.5 * (cov[0, 1] + cov[1, 0]),
        -0.5 * cov[1, 1],
    ]).astype(jnp.float32)

    out = pl.pallas_call(
        gmm_kernel,
        out_shape=jax.ShapeDtypeStruct((1, k_pad), jnp.float32),
        grid=(k_pad // tk,),
        in_specs=[
            pl.BlockSpec(memory_space=pltpu.MemorySpace.SMEM),   # scalars
            pl.BlockSpec((2, tk), lambda i: (0, i)),             # mu tile
        ],
        out_specs=pl.BlockSpec((1, tk), lambda i: (0, i)),
        compiler_params=pltpu.CompilerParams(
            dimension_semantics=("parallel",)),
    )(params, mu_t)
    return out[0, :K]


def _reference(x, mu, cov):
    d = x[None, :] - mu
    return GAUSS_C * jnp.exp(-0.5 * jnp.diagonal(d @ cov @ d.T))


if __name__ == "__main__":
    key = jax.random.PRNGKey(0)
    k_mu, k_x, k_mu2 = jax.random.split(key, 3)

    cov = INV_GAUSS_VAR * jnp.eye(2, dtype=jnp.float32)              # self.cov
    x = 0.01 * jax.random.normal(k_x, (2,), dtype=jnp.float32)       # self.x

    # Small case matching the module's typical size (K = 8 centers).
    K = 8
    mu = jax.random.normal(k_mu, (K, 2), dtype=jnp.float32)          # self.mu
    out = jax.block_until_ready(gmm_agent_forward(x, mu, cov))
    ref = _reference(x, mu, cov)
    assert out.shape == (K,)
    assert jnp.allclose(out, ref, rtol=1e-5, atol=1e-6), (out, ref)

    # Larger, non-multiple-of-tile K to exercise padding + multi-tile grid.
    K2 = 300
    mu2 = jax.random.normal(k_mu2, (K2, 2), dtype=jnp.float32)
    out2 = jax.block_until_ready(gmm_agent_forward(x, mu2, cov, tk=128))
    ref2 = _reference(x, mu2, cov)
    assert out2.shape == (K2,)
    assert jnp.allclose(out2, ref2, rtol=1e-5, atol=1e-6)

    print("KERNEL_OK")
</pallas_src>

<mosaic_0001>
module attributes {stable_mosaic.version = 11 : i64} {
  func.func @gmm_kernel(%arg0: i32, %arg1: memref<5xf32, #tpu.memory_space<smem>>, %arg2: memref<2x512xf32, #tpu.memory_space<vmem>>, %arg3: memref<1x512xf32, #tpu.memory_space<vmem>>) attributes {dimension_semantics = [#tpu.dimension_semantics<parallel>], iteration_bounds = array<i64: 1>, scalar_prefetch = 0 : i64, scratch_operands = 0 : i64, tpu.core_type = #tpu.core_type<tc>, window_params = [{transform_indices = @transform_0, window_bounds = array<i64: 5>}, {transform_indices = @transform_1, window_bounds = array<i64: 2, 512>}, {transform_indices = @transform_2, window_bounds = array<i64: 1, 512>}]} {
    %c0 = arith.constant 0 : index
    %0 = memref.load %arg1[%c0] : memref<5xf32, #tpu.memory_space<smem>>
    %c1 = arith.constant 1 : index
    %1 = memref.load %arg1[%c1] : memref<5xf32, #tpu.memory_space<smem>>
    %c2 = arith.constant 2 : index
    %2 = memref.load %arg1[%c2] : memref<5xf32, #tpu.memory_space<smem>>
    %c3 = arith.constant 3 : index
    %3 = memref.load %arg1[%c3] : memref<5xf32, #tpu.memory_space<smem>>
    %c4 = arith.constant 4 : index
    %4 = memref.load %arg1[%c4] : memref<5xf32, #tpu.memory_space<smem>>
    %c0_0 = arith.constant 0 : index
    %c0_1 = arith.constant 0 : index
    %5 = vector.load %arg2[%c0_0, %c0_1] : memref<2x512xf32, #tpu.memory_space<vmem>>, vector<1x512xf32>
    %6 = vector.broadcast %0 : f32 to vector<1x512xf32>
    %7 = arith.subf %6, %5 : vector<1x512xf32>
    %c1_2 = arith.constant 1 : index
    %c0_3 = arith.constant 0 : index
    %8 = vector.load %arg2[%c1_2, %c0_3] : memref<2x512xf32, #tpu.memory_space<vmem>>, vector<1x512xf32>
    %9 = vector.broadcast %1 : f32 to vector<1x512xf32>
    %10 = arith.subf %9, %8 : vector<1x512xf32>
    %11 = arith.mulf %7, %7 : vector<1x512xf32>
    %12 = vector.broadcast %2 : f32 to vector<1x512xf32>
    %13 = arith.mulf %12, %11 : vector<1x512xf32>
    %14 = arith.mulf %7, %10 : vector<1x512xf32>
    %15 = vector.broadcast %3 : f32 to vector<1x512xf32>
    %16 = arith.mulf %15, %14 : vector<1x512xf32>
    %17 = arith.addf %13, %16 : vector<1x512xf32>
    %18 = arith.mulf %10, %10 : vector<1x512xf32>
    %19 = vector.broadcast %4 : f32 to vector<1x512xf32>
    %20 = arith.mulf %19, %18 : vector<1x512xf32>
    %21 = arith.addf %17, %20 : vector<1x512xf32>
    %22 = math.exp %21 : vector<1x512xf32>
    %c0_4 = arith.constant 0 : index
    %c0_5 = arith.constant 0 : index
    %23 = vector.load %arg3[%c0_4, %c0_5] : memref<1x512xf32, #tpu.memory_space<vmem>>, vector<1x512xf32>
    tpu.vector_store %arg3[%c0_4, %c0_5], %22 {strides = array<i32>} : memref<1x512xf32, #tpu.memory_space<vmem>>, vector<1x512xf32>,
    return
  }
  func.func @transform_0(%arg0: i32) -> i32 {
    %c0_i32 = arith.constant 0 : i32
    %c0_i32_0 = arith.constant 0 : i32
    return %c0_i32 : i32
  }
  func.func @transform_1(%arg0: i32) -> (i32, i32) {
    %c0_i32 = arith.constant 0 : i32
    %c0_i32_0 = arith.constant 0 : i32
    return %c0_i32, %arg0 : i32, i32
  }
  func.func @transform_2(%arg0: i32) -> (i32, i32) {
    %c0_i32 = arith.constant 0 : i32
    %c0_i32_0 = arith.constant 0 : i32
    return %c0_i32, %arg0 : i32, i32
  }
}

</mosaic_0001>

<bundles_post_ra>
// kernel: tpu_custom_call.1
= control target key start
LH: loop header
LB: loop body
LE: loop exit
PB: predicated region body
PF: predicated region fallthrough
CT: control target
= control target key end

     0   :  { %7 = vsyncpa [#allocation5], 0  ;;  %s204_s0 = inlined_call_operand.hbm [shape: f32[5], index: 0, kind: input, shape index: {}]   ;;  %s205_s1 = inlined_call_operand.hbm [shape: f32[2,512], index: 1, kind: input, shape index: {}]   ;;  %s206_s2 = inlined_call_operand.hbm [shape: f32[1,512], index: 2, kind: output, shape index: {}]  }
   0x1   :  { %8 = vsyncpa [#allocation3], 0 }
   0x2   :  { %9 = vsyncpa [#allocation4], 0  ;;  %s90_s11 = scalar_lea.hbm %s204_s0, 16 }
   0x3   :  { %p91_p0 = scmp.ne.s32.totalorder %s204_s0, %s90_s11  ;;  %p94_p1 = scmp.lt.u32.totalorder %s90_s11, %s204_s0 }
   0x5   :  { %p96_p2 = pnand %p94_p1, %p91_p0 }
   0x7   :  { %99 = shalt.err (!%p96_p2)
}
   0x8   :  { %s150_s16 = smov [#allocation2]   ;;  %s151_s19 = smov [#allocation6]  }
   0x9   :  { %17 = dma.hbm_to_smem %s204_s0, 16, %s150_s16, [#allocation5]  }
   0xa   :  { %s24_s20 = sshll.u32 %s151_s19, 4  ;;  %s100_s23 = scalar_lea.hbm %s205_s1, 128  ;;  %s25_s20 = int_to_ptr.vmem [resolvable:$true] %s24_s20 }
   0xb   :  { %p101_p3 = scmp.ne.s32.totalorder %s205_s1, %s100_s23  ;;  %p104_p4 = scmp.lt.u32.totalorder %s100_s23, %s205_s1 }
   0xd   :  { %p106_p5 = pnand %p104_p4, %p101_p3 }
   0xf   :  { %109 = shalt.err (!%p106_p5)
}
  0x10   :  { %s110_s28 = scalar_lea.vmem %s25_s20, 128  ;;  %p115_p7 = scmp.lt.s32.totalorder %s25_s20, %s25_s20 }
  0x11   :  { %p111_p6 = scmp.ne.s32.totalorder %s25_s20, %s110_s28  ;;  %p116_p8 = scmp.lt.s32.totalorder %s110_s28, %s110_s28 }
  0x13   :  { %p117_p9 = por %p116_p8, %p115_p7 }
  0x15   :  { %p118_p10 = pnand %p117_p9, %p111_p6 }
  0x17   :  { %121 = shalt.err (!%p118_p10)
}
  0x18   :  { %27 = dma.hbm_to_vmem [thread:$0]  %s205_s1, 128, %s25_s20, [#allocation3]  }
  0x19   :  { %144 = dma.done.wait [#allocation5], 16  }
  0x1a   :  { %145 = vsyncadd [#allocation5], 4294967280 }
  0x1b   :  { %146 = dma.done.wait [#allocation3], 128  }
  0x1c   :  { %147 = vsyncadd [#allocation3], 4294967168 }
  0x1d   :  { %34 = sfence }
  0x1e   :  { %s35_s30 = sld [smem:[#allocation2]]  ;;  %s81_s3 = sld [smem:[#allocation2 + $0x1]]  ;;  %v40_v0 = vld [vmem:[#allocation6] ss:$2 sm:$0xf]  ;;  %v60_v18 = vlaneseq }
  0x1f   :  { %s82_s4 = sld [smem:[#allocation2 + $0x2]]  ;;  %s83_s5 = sld [smem:[#allocation2 + $0x3]]  ;;  %v44_v1 = vld [vmem:[#allocation6 + $0x1] ss:$2 sm:$0xf] }
  0x20   :  { %s84_s6 = sld [smem:[#allocation2 + $0x4]]  ;;  %s152_s1 = smov [#allocation7]   ;;  %vm62_vm0 = vcmp.lt.s32.totalorder %v60_v18, 512 }
  0x21   :  { %s71_s7 = sshll.u32 %s152_s1, 4  ;;  %s72_s7 = int_to_ptr.vmem [resolvable:$true] %s71_s7 }
  0x22   :  { %s122_s8 = scalar_lea.vmem %s72_s7, 64  ;;  %p127_p12 = scmp.lt.s32.totalorder %s72_s7, %s72_s7 }
  0x23   :  { %p123_p11 = scmp.ne.s32.totalorder %s72_s7, %s122_s8  ;;  %p128_p13 = scmp.lt.s32.totalorder %s122_s8, %s122_s8 }
  0x24   :  { %v41_v2 = vstv %s35_s30  ;;  %v45_v3 = vstv %s81_s3 }
  0x25   :  { %v42_v4 = vsub.f32 %v41_v2, %v40_v0  ;;  %v46_v5 = vsub.f32 %v45_v3, %v44_v1  ;;  %v48_v6 = vstv %s82_s4  ;;  %v51_v7 = vstv %s83_s5  ;;  %p129_p0 = por %p128_p13, %p127_p12 }
  0x26   :  { %v55_v8 = vstv %s84_s6 }
  0x27   :  { %v47_v9 = vmul.f32 %v42_v4, %v42_v4  ;;  %v50_v10 = vmul.f32 %v46_v5, %v42_v4  ;;  %v54_v11 = vmul.f32 %v46_v5, %v46_v5  ;;  %p130_p1 = pnand %p129_p0, %p123_p11 }
  0x29   :  { %v49_v12 = vmul.f32 %v48_v6, %v47_v9  ;;  %v52_v13 = vmul.f32 %v51_v7, %v50_v10  ;;  %v56_v14 = vmul.f32 %v55_v8, %v54_v11 }
  0x2b   :  { %v53_v15 = vadd.f32 %v52_v13, %v49_v12 }
  0x2d   :  { %v57_v16 = vadd.f32 %v56_v14, %v53_v15 }
  0x2f   :  { %v58_v17 = vmul.f32 1.442695, %v57_v16 }
  0x31   :  { %88 = vpow2.f32 %v58_v17 }
  0x3b   :  { %v89_v19 = vpop.eup %88 }
  0x3c   :  { %64 = vst.msk [vmem:[#allocation7] sm:$0xf] %vm62_vm0, %v89_v19 }
  0x3d   :  { %133 = shalt.err (!%p130_p1)
}
  0x3e   :  { %s134_s11 = scalar_lea.hbm %s206_s2, 64 }
  0x3f   :  { %p135_p2 = scmp.ne.s32.totalorder %s206_s2, %s134_s11  ;;  %p138_p3 = scmp.lt.u32.totalorder %s134_s11, %s206_s2 }
  0x41   :  { %p140_p4 = pnand %p138_p3, %p135_p2 }
  0x43   :  { %143 = shalt.err (!%p140_p4)
}
  0x44   :  { %74 = dma.vmem_to_hbm [thread:$0]  %s72_s7, 64, %s206_s2, [#allocation4]  }
  0x45   :  { %148 = dma.done.wait [#allocation4], 64  }
  0x46   :  { %149 = vsyncadd [#allocation4], 4294967232 }
  0x47   :  { %78 = vsyncpa [#allocation3], 1 }
  0x48   :  { %79 = vsyncpa [#allocation4], 1 }
  0x49   :  { %80 = vsyncpa [#allocation5], 1 }

</bundles_post_ra>
